<compile_context>
chip_gen: v7x
topology: tpu7x:2x2x1
jax: 0.10.0
libtpu: 0.0.40
codegen_flags: <defaults>
</compile_context>

<pallas_src>
import functools

import jax
import jax.numpy as jnp
from jax.experimental import pallas as pl
from jax.experimental.pallas import tpu as pltpu

EPSILON = 1e-5
_SUBLANE_FOLD = 8


def _dice_partial_kernel(x_ref, t_ref, out_ref, *, num_channels, tile_cols,
                         total_cols, valid_size, need_mask):
    x = x_ref[...].astype(jnp.float32)        # (C, 8, TILE) logits
    t = t_ref[...].astype(jnp.float32)        # (C, 8, TILE) targets

    # Channel softmax over the leading axis.  Each x[ci] is a fully packed
    # (8, TILE) slab, so the max/add trees are pure VPU work.
    m = x[0]
    for ci in range(1, num_channels):
        m = jnp.maximum(m, x[ci])
    e = jnp.exp(x - m)                        # EUP
    denom = e[0]
    for ci in range(1, num_channels):
        denom = denom + e[ci]
    inv = pl.reciprocal(denom, approx=True)   # EUP seed (free slot)
    inv = inv * (2.0 - denom * inv)           # one Newton step -> f32 accuracy

    if need_mask:
        # Padded spatial positions hold zero logits; their softmax would add
        # 1/C per channel to sum_p, so zero the softmax weights there.
        sub = jax.lax.broadcasted_iota(jnp.int32, (_SUBLANE_FOLD, tile_cols), 0)
        col = jax.lax.broadcasted_iota(jnp.int32, (_SUBLANE_FOLD, tile_cols), 1)
        gcol = pl.program_id(1) * tile_cols + col
        flat = sub * total_cols + gcol        # flat index in the padded view
        inv = jnp.where(flat < valid_size, inv, 0.0)

    p = e * inv                               # (C, 8, TILE) softmax probs

    # Per-tile partial sums: lane reduce then sublane reduce (XLU, idle here).
    inter = jnp.sum(jnp.sum(p * t, axis=-1), axis=-1)            # (C,)
    union = (jnp.sum(jnp.sum(p, axis=-1), axis=-1)
             + jnp.sum(jnp.sum(t, axis=-1), axis=-1))            # (C,)

    out_ref[:, 0:num_channels] = inter.reshape(1, num_channels)
    out_ref[:, num_channels:] = union.reshape(1, num_channels)


def _plan_spatial_tiling(s, c, itemsize, target_cols):
    """Fold spatial by 8 into sublanes and pick a lane tile.

    Returns (s_padded, cols, tile_cols, num_tiles) with cols = s_padded // 8.
    """
    # Keep one input block around <= ~2 MiB so double-buffered inputs plus the
    # elementwise temporaries fit comfortably in a 32 MiB scoped VMEM limit
    # (and under v7x's 64 MiB physical VMEM).
    budget_cols = (2 * 1024 * 1024) // max(1, c * _SUBLANE_FOLD * itemsize)
    budget_cols = max(128, (budget_cols // 128) * 128)
    target = max(128, min(int(target_cols), budget_cols))

    cols_needed = -(-s // _SUBLANE_FOLD)      # ceil(s / 8)
    if cols_needed <= target:
        # Single spatial tile: a full-extent lane dimension is always legal,
        # only pad s up to a multiple of 8 for the sublane fold.
        cols = cols_needed
        return cols * _SUBLANE_FOLD, cols, cols, 1

    tile = (target // 128) * 128
    num_tiles = -(-cols_needed // tile)
    cols = num_tiles * tile
    return cols * _SUBLANE_FOLD, cols, tile, num_tiles


def mean_dice_loss(inputs_nchw, targets_nchw, *, epsilon=EPSILON,
                   spatial_tile_cols=16384):
    """inputs_nchw: (N, C, H, W) logits; targets_nchw: (N, C, H, W) one-hot.

    Targets may be any dtype (int8/bool one-hot halves their HBM traffic);
    they are cast to f32 inside the kernel. Returns a scalar f32 loss.
    """
    n, c, h, w = inputs_nchw.shape
    s = h * w
    itemsize = max(jnp.dtype(inputs_nchw.dtype).itemsize,
                   jnp.dtype(targets_nchw.dtype).itemsize)
    s_pad, cols, tile_cols, num_tiles = _plan_spatial_tiling(
        s, c, itemsize, spatial_tile_cols)

    # Free view (no transpose): NCHW -> (N, C, S); pad S only when ragged.
    x = inputs_nchw.reshape(n, c, s)
    t = targets_nchw.reshape(n, c, s)
    need_mask = s_pad != s
    if need_mask:
        pad = s_pad - s
        x = jnp.pad(x, ((0, 0), (0, 0), (0, pad)))
        t = jnp.pad(t, ((0, 0), (0, 0), (0, pad)))
    x = x.reshape(n, c, _SUBLANE_FOLD, cols)
    t = t.reshape(n, c, _SUBLANE_FOLD, cols)

    kernel = functools.partial(
        _dice_partial_kernel, num_channels=c, tile_cols=tile_cols,
        total_cols=cols, valid_size=s, need_mask=need_mask)

    # Per-(batch, tile) partials: lanes [0:C] = intersection, [C:2C] = union.
    partials = pl.pallas_call(
        kernel,
        out_shape=jax.ShapeDtypeStruct((n, num_tiles, 1, 2 * c), jnp.float32),
        grid_spec=pltpu.PrefetchScalarGridSpec(
            num_scalar_prefetch=0,
            grid=(n, num_tiles),
            in_specs=[
                pl.BlockSpec((None, c, _SUBLANE_FOLD, tile_cols),
                             lambda b, si: (b, 0, 0, si)),
                pl.BlockSpec((None, c, _SUBLANE_FOLD, tile_cols),
                             lambda b, si: (b, 0, 0, si)),
            ],
            out_specs=pl.BlockSpec((None, None, 1, 2 * c),
                                   lambda b, si: (b, si, 0, 0)),
        ),
        compiler_params=pltpu.CompilerParams(
            dimension_semantics=("parallel", "parallel"),
            vmem_limit_bytes=32 * 1024 * 1024),
    )(x, t)

    # Tiny epilogue in plain XLA: reduce partials, dice, mean, 1 - score.
    totals = jnp.sum(partials[:, :, 0, :], axis=(0, 1))          # (2C,)
    inter = totals[:c]
    union = totals[c:]
    dice = (2.0 * inter + epsilon) / (union + epsilon)
    return 1.0 - jnp.mean(dice)


def _reference(inputs_nchw, targets_nchw, epsilon=EPSILON):
    p = jax.nn.softmax(inputs_nchw.astype(jnp.float32), axis=1)
    t = targets_nchw.astype(jnp.float32)
    dims = (0, 2, 3)
    inter = jnp.sum(p * t, axis=dims)
    union = jnp.sum(p, axis=dims) + jnp.sum(t, axis=dims)
    dice = (2.0 * inter + epsilon) / (union + epsilon)
    return 1.0 - jnp.mean(dice)


def _make_case(key, n, c, h, w):
    k1, k2 = jax.random.split(key)
    inputs = jax.random.normal(k1, (n, c, h, w), dtype=jnp.float32)
    labels = jax.random.randint(k2, (n, h, w), 0, c)
    targets = jnp.transpose(
        jax.nn.one_hot(labels, c, dtype=jnp.float32), (0, 3, 1, 2))
    return inputs, targets


if __name__ == "__main__":
    key = jax.random.PRNGKey(0)
    keys = jax.random.split(key, 3)

    # Case 1: the canonical small shape (single spatial tile, no masking).
    inputs, targets = _make_case(keys[0], 2, 4, 16, 16)
    loss = jax.block_until_ready(mean_dice_loss(inputs, targets))
    ref = _reference(inputs, targets)
    assert jnp.allclose(loss, ref, atol=1e-5, rtol=1e-4), (loss, ref)

    # Case 1b: int8 one-hot targets (reduced-HBM-traffic path), same answer.
    loss_i8 = jax.block_until_ready(
        mean_dice_loss(inputs, targets.astype(jnp.int8)))
    assert jnp.allclose(loss_i8, ref, atol=1e-5, rtol=1e-4), (loss_i8, ref)

    # Case 2: multi-tile spatial grid + padded/masked columns (cdiv grid).
    inputs2, targets2 = _make_case(keys[1], 2, 4, 48, 48)
    loss2 = jax.block_until_ready(
        mean_dice_loss(inputs2, targets2, spatial_tile_cols=128))
    ref2 = _reference(inputs2, targets2)
    assert jnp.allclose(loss2, ref2, atol=1e-5, rtol=1e-4), (loss2, ref2)

    # Case 3: spatial size not divisible by the sublane fold (mask path).
    inputs3, targets3 = _make_case(keys[2], 2, 4, 10, 10)
    loss3 = jax.block_until_ready(mean_dice_loss(inputs3, targets3))
    ref3 = _reference(inputs3, targets3)
    assert jnp.allclose(loss3, ref3, atol=1e-5, rtol=1e-4), (loss3, ref3)

    print("KERNEL_OK")
</pallas_src>

<mosaic_0001>
module attributes {stable_mosaic.version = 11 : i64} {
  func.func @_dice_partial_kernel(%arg0: i32, %arg1: i32, %arg2: memref<1x4x8x32xf32, #tpu.memory_space<vmem>>, %arg3: memref<1x4x8x32xf32, #tpu.memory_space<vmem>>, %arg4: memref<1x1x1x8xf32, #tpu.memory_space<vmem>>) attributes {dimension_semantics = [#tpu.dimension_semantics<parallel>, #tpu.dimension_semantics<parallel>], iteration_bounds = array<i64: 2, 1>, scalar_prefetch = 0 : i64, scratch_operands = 0 : i64, tpu.core_type = #tpu.core_type<tc>, window_params = [{transform_indices = @transform_0, window_bounds = array<i64: 1, 4, 8, 32>}, {transform_indices = @transform_1, window_bounds = array<i64: 1, 4, 8, 32>}, {transform_indices = @transform_2, window_bounds = array<i64: 1, 1, 1, 8>}]} {
    %c0 = arith.constant 0 : index
    %c0_0 = arith.constant 0 : index
    %c0_1 = arith.constant 0 : index
    %c0_2 = arith.constant 0 : index
    %0 = vector.load %arg2[%c0, %c0_0, %c0_1, %c0_2] : memref<1x4x8x32xf32, #tpu.memory_space<vmem>>, vector<1x4x8x32xf32>
    %1 = vector.shape_cast %0 : vector<1x4x8x32xf32> to vector<4x8x32xf32>
    %c0_3 = arith.constant 0 : index
    %c0_4 = arith.constant 0 : index
    %c0_5 = arith.constant 0 : index
    %c0_6 = arith.constant 0 : index
    %2 = vector.load %arg3[%c0_3, %c0_4, %c0_5, %c0_6] : memref<1x4x8x32xf32, #tpu.memory_space<vmem>>, vector<1x4x8x32xf32>
    %3 = vector.shape_cast %2 : vector<1x4x8x32xf32> to vector<4x8x32xf32>
    %4 = vector.extract_strided_slice %1 {offsets = [0, 0, 0], sizes = [1, 8, 32], strides = [1, 1, 1]} : vector<4x8x32xf32> to vector<1x8x32xf32>
    %5 = vector.shape_cast %4 : vector<1x8x32xf32> to vector<8x32xf32>
    %6 = vector.extract_strided_slice %1 {offsets = [1, 0, 0], sizes = [1, 8, 32], strides = [1, 1, 1]} : vector<4x8x32xf32> to vector<1x8x32xf32>
    %7 = vector.shape_cast %6 : vector<1x8x32xf32> to vector<8x32xf32>
    %8 = arith.maximumf %5, %7 : vector<8x32xf32>
    %9 = vector.extract_strided_slice %1 {offsets = [2, 0, 0], sizes = [1, 8, 32], strides = [1, 1, 1]} : vector<4x8x32xf32> to vector<1x8x32xf32>
    %10 = vector.shape_cast %9 : vector<1x8x32xf32> to vector<8x32xf32>
    %11 = arith.maximumf %8, %10 : vector<8x32xf32>
    %12 = vector.extract_strided_slice %1 {offsets = [3, 0, 0], sizes = [1, 8, 32], strides = [1, 1, 1]} : vector<4x8x32xf32> to vector<1x8x32xf32>
    %13 = vector.shape_cast %12 : vector<1x8x32xf32> to vector<8x32xf32>
    %14 = arith.maximumf %11, %13 : vector<8x32xf32>
    %15 = vector.shape_cast %14 : vector<8x32xf32> to vector<1x8x32xf32>
    %16 = vector.broadcast %15 : vector<1x8x32xf32> to vector<4x8x32xf32>
    %17 = arith.subf %1, %16 : vector<4x8x32xf32>
    %18 = math.exp %17 : vector<4x8x32xf32>
    %19 = vector.extract_strided_slice %18 {offsets = [0, 0, 0], sizes = [1, 8, 32], strides = [1, 1, 1]} : vector<4x8x32xf32> to vector<1x8x32xf32>
    %20 = vector.shape_cast %19 : vector<1x8x32xf32> to vector<8x32xf32>
    %21 = vector.extract_strided_slice %18 {offsets = [1, 0, 0], sizes = [1, 8, 32], strides = [1, 1, 1]} : vector<4x8x32xf32> to vector<1x8x32xf32>
    %22 = vector.shape_cast %21 : vector<1x8x32xf32> to vector<8x32xf32>
    %23 = arith.addf %20, %22 : vector<8x32xf32>
    %24 = vector.extract_strided_slice %18 {offsets = [2, 0, 0], sizes = [1, 8, 32], strides = [1, 1, 1]} : vector<4x8x32xf32> to vector<1x8x32xf32>
    %25 = vector.shape_cast %24 : vector<1x8x32xf32> to vector<8x32xf32>
    %26 = arith.addf %23, %25 : vector<8x32xf32>
    %27 = vector.extract_strided_slice %18 {offsets = [3, 0, 0], sizes = [1, 8, 32], strides = [1, 1, 1]} : vector<4x8x32xf32> to vector<1x8x32xf32>
    %28 = vector.shape_cast %27 : vector<1x8x32xf32> to vector<8x32xf32>
    %29 = arith.addf %26, %28 : vector<8x32xf32>
    %30 = tpu.reciprocal %29 {approx = true} : vector<8x32xf32> -> vector<8x32xf32>
    %31 = arith.mulf %29, %30 : vector<8x32xf32>
    %cst = arith.constant 2.000000e+00 : f32
    %32 = vector.broadcast %cst : f32 to vector<8x32xf32>
    %33 = arith.subf %32, %31 : vector<8x32xf32>
    %34 = arith.mulf %30, %33 : vector<8x32xf32>
    %35 = vector.shape_cast %34 : vector<8x32xf32> to vector<1x8x32xf32>
    %36 = vector.broadcast %35 : vector<1x8x32xf32> to vector<4x8x32xf32>
    %37 = arith.mulf %18, %36 : vector<4x8x32xf32>
    %38 = arith.mulf %37, %3 : vector<4x8x32xf32>
    %cst_7 = arith.constant dense<0.000000e+00> : vector<4x8xf32>
    %39 = vector.multi_reduction <add>, %38, %cst_7 [2] : vector<4x8x32xf32> to vector<4x8xf32>
    %cst_8 = arith.constant dense<0.000000e+00> : vector<4xf32>
    %40 = vector.multi_reduction <add>, %39, %cst_8 [1] : vector<4x8xf32> to vector<4xf32>
    %cst_9 = arith.constant dense<0.000000e+00> : vector<4x8xf32>
    %41 = vector.multi_reduction <add>, %37, %cst_9 [2] : vector<4x8x32xf32> to vector<4x8xf32>
    %cst_10 = arith.constant dense<0.000000e+00> : vector<4xf32>
    %42 = vector.multi_reduction <add>, %41, %cst_10 [1] : vector<4x8xf32> to vector<4xf32>
    %cst_11 = arith.constant dense<0.000000e+00> : vector<4x8xf32>
    %43 = vector.multi_reduction <add>, %3, %cst_11 [2] : vector<4x8x32xf32> to vector<4x8xf32>
    %cst_12 = arith.constant dense<0.000000e+00> : vector<4xf32>
    %44 = vector.multi_reduction <add>, %43, %cst_12 [1] : vector<4x8xf32> to vector<4xf32>
    %45 = arith.addf %42, %44 : vector<4xf32>
    %46 = vector.shape_cast %40 : vector<4xf32> to vector<1x4xf32>
    %c0_13 = arith.constant 0 : index
    %c0_14 = arith.constant 0 : index
    %c0_15 = arith.constant 0 : index
    %c0_16 = arith.constant 0 : index
    %47 = vector.load %arg4[%c0_13, %c0_14, %c0_15, %c0_16] : memref<1x1x1x8xf32, #tpu.memory_space<vmem>>, vector<1x1x1x4xf32>
    %48 = vector.shape_cast %47 : vector<1x1x1x4xf32> to vector<1x4xf32>
    %49 = vector.shape_cast %46 : vector<1x4xf32> to vector<1x1x1x4xf32>
    tpu.vector_store %arg4[%c0_13, %c0_14, %c0_15, %c0_16], %49 {strides = array<i32>} : memref<1x1x1x8xf32, #tpu.memory_space<vmem>>, vector<1x1x1x4xf32>,
    %50 = vector.shape_cast %45 : vector<4xf32> to vector<1x4xf32>
    %c0_17 = arith.constant 0 : index
    %c0_18 = arith.constant 0 : index
    %c0_19 = arith.constant 0 : index
    %c4 = arith.constant 4 : index
    %51 = vector.load %arg4[%c0_17, %c0_18, %c0_19, %c4] : memref<1x1x1x8xf32, #tpu.memory_space<vmem>>, vector<1x1x1x4xf32>
    %52 = vector.shape_cast %51 : vector<1x1x1x4xf32> to vector<1x4xf32>
    %53 = vector.shape_cast %50 : vector<1x4xf32> to vector<1x1x1x4xf32>
    tpu.vector_store %arg4[%c0_17, %c0_18, %c0_19, %c4], %53 {strides = array<i32>} : memref<1x1x1x8xf32, #tpu.memory_space<vmem>>, vector<1x1x1x4xf32>,
    return
  }
  func.func @transform_0(%arg0: i32, %arg1: i32) -> (i32, i32, i32, i32) {
    %c0_i32 = arith.constant 0 : i32
    %c0_i32_0 = arith.constant 0 : i32
    %c0_i32_1 = arith.constant 0 : i32
    return %arg0, %c0_i32, %c0_i32_0, %arg1 : i32, i32, i32, i32
  }
  func.func @transform_1(%arg0: i32, %arg1: i32) -> (i32, i32, i32, i32) {
    %c0_i32 = arith.constant 0 : i32
    %c0_i32_0 = arith.constant 0 : i32
    %c0_i32_1 = arith.constant 0 : i32
    return %arg0, %c0_i32, %c0_i32_0, %arg1 : i32, i32, i32, i32
  }
  func.func @transform_2(%arg0: i32, %arg1: i32) -> (i32, i32, i32, i32) {
    %c0_i32 = arith.constant 0 : i32
    %c0_i32_0 = arith.constant 0 : i32
    %c0_i32_1 = arith.constant 0 : i32
    return %arg0, %arg1, %c0_i32, %c0_i32_0 : i32, i32, i32, i32
  }
}

</mosaic_0001>

<bundles_post_ra>
// kernel: tpu_custom_call.1
= control target key start
LH: loop header
LB: loop body
LE: loop exit
PB: predicated region body
PF: predicated region fallthrough
CT: control target
= control target key end

     0   :  { %7 = vsyncpa [#allocation3], 0  ;;  %s1047_s0 = inlined_call_operand.hbm [shape: f32[2,4,8,32], index: 0, kind: input, shape index: {}]   ;;  %s1048_s1 = inlined_call_operand.hbm [shape: f32[2,4,8,32], index: 1, kind: input, shape index: {}]   ;;  %s1049_s2 = inlined_call_operand.hbm [shape: f32[2,1,1,8], index: 2, kind: output, shape index: {}]  }
   0x1   :  { %9 = vsyncpa [#allocation3 + $0x1], 0 }
   0x2   :  { %10 = vsyncpa [#allocation6], 0 }
   0x3   :  { %12 = vsyncpa [#allocation6 + $0x1], 0 }
   0x4   :  { %13 = vsyncpa [#allocation4], 0 }
   0x5   :  { %15 = vsyncpa [#allocation4 + $0x1], 0  ;;  %s782_s9 = smov 0   ;;  %s784_s10 = smov 0  }
   0x6   :  { %s786_s11 = smov 0   ;;  %s788_s12 = smov 0  }
   0x7   :  { %s790_s13 = smov 0   ;;  %s792_s14 = smov 0  }
   0x8 LB: > { %s517_s15 = sadd.s32 4294967295, %s760_s14   ;;  %s518_s16 = sadd.s32 4294967294, %s760_s14   ;;  %s760_s14 = sphi %s792_s14, %s21_s14   ;;  %s756_s13 = sphi %s790_s13, %s1067_s13   ;;  %s752_s12 = sphi %s788_s12, %s1066_s12   ;;  %s748_s11 = sphi %s786_s11, %s1065_s11   ;;  %s744_s10 = sphi %s784_s10, %s1064_s10   ;;  %s740_s9 = sphi %s782_s9, %s1063_s9  }
   0x9   : > { %s33_s17 = sadd.s32 1, %s756_s13  ;;  %s42_s18 = sadd.s32 1, %s748_s11 }
   0xa   : > { %p35_p0 = scmp.ge.s32.totalorder %s33_s17, 2  ;;  %p49_p1 = scmp.ne.s32.totalorder %s748_s11, %s744_s10 }
   0xb   : > { %p50_p2 = scmp.eq.s32.totalorder %s760_s14, 0  ;;  %p55_p3 = scmp.ne.s32.totalorder %s744_s10, %s740_s9 }
   0xc   : > { %s1069_s17 = smov (%p35_p0, %s33_s17), 0  ;;  %p56_p5 = scmp.eq.s32.totalorder %s517_s15, 0 }
   0xd   : > { %p823_p4 = por %p50_p2, %p49_p1  ;;  %s37_s20 = ssub.s32 %s756_s13, %s1069_s17 }
   0xe   : > { %p109_p6 = scmp.eq.s32.totalorder %s517_s15, 1  ;;  %p40_p7 = scmp.eq.s32.totalorder %s37_s20, 0 }
   0xf   : > { %p829_p8 = por %p56_p5, %p55_p3  ;;  %p115_p10 = scmp.eq.s32.totalorder %s518_s16, 1 }
  0x10   : > { %p833_p9 = por %p109_p6, %p49_p1  ;;  %p552_p13 = scmp.lt.s32.totalorder %s760_s14, 2 }
  0x11   : > { %s1053_s21 = scalar_select %p829_p8, 1, 0 }
  0x12   : > { %s1054_s22 = scalar_select %p833_p9, 1, 0 }
  0x13   : > { %s838_s23 = scalar_select %p40_p7, %s748_s11, %s42_s18  }
  0x14   : > { %p840_p11 = por %p115_p10, %p55_p3  ;;  %s847_s25 = sand.u32 1, %s748_s11  }
  0x15   : > { %s521_s26 = sshll.u32 %s847_s25, 5  ;;  %s533_s27 = sshll.u32 %s756_s13, 9 }
  0x16   : > { %s1055_s24 = scalar_select %p840_p11, 1, 0 }
  0x17   : > { %s856_s30 = scalar_lea.hbm %s1047_s0, %s533_s27  ;;  %s139_s3 = scalar_lea.vmem [#allocation2], %s521_s26 }
  0x18   : > { %s147_s4 = sshll.u32 %s139_s3, 4  ;;  %p864_p0 = pnand %p552_p13, %p823_p4  ;;  %s860_s4 = int_to_ptr.vmem [resolvable:$true] %s147_s4 }
  0x19   : > { %s136_s6 = scalar_lea.sflag [#allocation3], %s847_s25  ;;  %s614_s7 = scalar_lea.hbm %s856_s30, 512 }
  0x1a   : > { %p615_p2 = scmp.ne.s32.totalorder %s856_s30, %s614_s7  ;;  %p616_p3 = pneg %p864_p0 }
  0x1b   : > { %s619_s16 = scalar_lea.hbm %s1047_s0, 1024  ;;  %p620_p4 = scmp.lt.u32.totalorder %s856_s30, %s1047_s0 }
  0x1c   : > { %p617_p5 = pnand %p616_p3, %p615_p2  ;;  %p621_p7 = scmp.lt.u32.totalorder %s619_s16, %s614_s7 }
  0x1d   : > { %p623_p13 = scmp.lt.u32.totalorder %s614_s7, %s856_s30 }
  0x1e   : > { %p618_p6 = pneg %p617_p5  ;;  %p622_p10 = por %p621_p7, %p620_p4 }
  0x20   : > { %p624_p12 = por %p623_p13, %p622_p10 }
  0x22   : > { %p625_p1 = pnand %p624_p12, %p618_p6 }
  0x24   : > { %628 = shalt.err (!%p625_p1)
}
  0x25   : > { %s629_s20 = scalar_lea.vmem %s860_s4, 512  ;;  %s762_s28 = smov [#allocation2]  }
  0x26   : > { %p630_p2 = scmp.ne.s32.totalorder %s860_s4, %s629_s20  ;;  %s634_s29 = sshll.u32 %s762_s28, 4  ;;  %s635_s29 = int_to_ptr.vmem [resolvable:$false] %s634_s29 }
  0x27   : > { %s636_s3 = scalar_lea.vmem %s635_s29, 1024  ;;  %p637_p9 = scmp.lt.s32.totalorder %s860_s4, %s635_s29 }
  0x28   : > { %p632_p5 = pnand %p630_p2, %p616_p3  ;;  %p638_p4 = scmp.lt.s32.totalorder %s636_s3, %s629_s20 }
  0x2a   : > { %p633_p11 = pneg %p632_p5  ;;  %p639_p7 = por %p638_p4, %p637_p9 }
  0x2c   : > { %p640_p10 = pnand %p639_p7, %p633_p11 }
  0x2e   : > { %643 = shalt.err (!%p640_p10)
}
  0x2f   : > { %s763_s7 = smov 128   ;;  %s764_s8 = smov 8  }
  0x30   : > { %544 = dma.hbm_to_vmem [thread:$0]  (!%p864_p0), %s856_s30, 512, %s860_s4, %s136_s6, %s763_s7, %s763_s7, %s764_s8  }
  0x31   : > { %p177_p9 = scmp.lt.s32.totalorder %s760_s14, 3  ;;  %s906_s18 = scalar_lea.hbm %s1048_s1, %s533_s27 }
  0x32   : > { %p1057_p11 = scmp.ge.s32.totalorder %s760_s14, 1  ;;  %s161_s20 = scalar_lea.vmem [#allocation5], %s521_s26 }
  0x33   : > { %s169_s28 = sshll.u32 %s161_s20, 4  ;;  %s158_s30 = scalar_lea.sflag [#allocation6], %s847_s25  ;;  %s916_s28 = int_to_ptr.vmem [resolvable:$true] %s169_s28 }
  0x34   : > { %p910_p12 = pnand %p1057_p11, %p177_p9  ;;  %s644_s4 = scalar_lea.hbm %s906_s18, 512 }
  0x35   : > { %p645_p1 = scmp.ne.s32.totalorder %s906_s18, %s644_s4  ;;  %s649_s29 = scalar_lea.hbm %s1048_s1, 1024 }
  0x36   : > { %p650_p2 = scmp.lt.u32.totalorder %s906_s18, %s1048_s1  ;;  %p651_p5 = scmp.lt.u32.totalorder %s649_s29, %s644_s4 }
  0x37   : > { %p647_p6 = pnand %p645_p1, %p616_p3  ;;  %p653_p7 = scmp.lt.u32.totalorder %s644_s4, %s906_s18 }
  0x38   : > { %p652_p4 = por %p651_p5, %p650_p2 }
  0x39   : > { %p648_p13 = pneg %p647_p6 }
  0x3a   : > { %p654_p10 = por %p653_p7, %p652_p4 }
  0x3c   : > { %p655_p9 = pnand %p654_p10, %p648_p13 }
  0x3e   : > { %658 = shalt.err (!%p655_p9)
}
  0x3f   : > { %s659_s26 = scalar_lea.vmem %s916_s28, 512  ;;  %s765_s16 = smov [#allocation5]  }
  0x40   : > { %p660_p11 = scmp.ne.s32.totalorder %s916_s28, %s659_s26  ;;  %s664_s20 = sshll.u32 %s765_s16, 4  ;;  %s665_s20 = int_to_ptr.vmem [resolvable:$false] %s664_s20 }
  0x41   : > { %s666_s27 = scalar_lea.vmem %s665_s20, 1024  ;;  %p667_p8 = scmp.lt.s32.totalorder %s916_s28, %s665_s20 }
  0x42   : > { %p662_p1 = pnand %p660_p11, %p616_p3  ;;  %p668_p2 = scmp.lt.s32.totalorder %s666_s27, %s659_s26 }
  0x44   : > { %p663_p6 = pneg %p662_p1  ;;  %p669_p5 = por %p668_p2, %p667_p8 }
  0x46   : > { %p670_p4 = pnand %p669_p5, %p663_p6 }
  0x48   : > { %673 = shalt.err (!%p670_p4)
}
  0x49   : > { %547 = dma.hbm_to_vmem [thread:$0]  (!%p864_p0), %s906_s18, 512, %s916_s28, %s158_s30, %s763_s7, %s763_s7, %s764_s8  }
  0x4a   : > { %181 = sbr.rel (%p910_p12) target bundleno = 460 (0x1cc), region = 28  ;;  %s950_s4 = sand.u32 (!%p910_p12), 1, %s744_s10  }
  0x4b   : > { %s528_s6 = sshll.u32 (!%p910_p12), %s950_s4, 5  ;;  %s184_s29 = scalar_lea.sflag (!%p910_p12), [#allocation3], %s950_s4 }
  0x4c   : > { %s187_s5 = scalar_lea.vmem (!%p910_p12), [#allocation2], %s528_s6  ;;  %p1059_p8 = scmp.ne.s32.totalorder (!%p910_p12), %s1053_s21, 0 }
  0x51   : > { %727 = dma.done.wait (%p1059_p8), %s184_s29, 512  }
  0x52   : > { %729 = vsyncadd (%p1059_p8), %s184_s29, 4294966784  ;;  %s193_s25 = scalar_lea.sflag [#allocation6], %s950_s4  ;;  %s959_s7 = scalar_lea.vmem [#allocation5], %s528_s6 }
  0x53   : > { %731 = dma.done.wait (%p1059_p8), %s193_s25, 512  }
  0x54   : > { %733 = vsyncadd (%p1059_p8), %s193_s25, 4294966784  ;;  %vm259_vm0 = vcmask 261120   ;;  %v225_v0 = vld [vmem:[%s959_s7] sm:$0xff]  ;;  %v222_v2 = vld [vmem:[%s187_s5 + $0x8] sm:$0xff]  ;;  %v276_v52 = vlaneseq  ;;  %vm294_vm1 = vcmask 1041409   ;;  %vm298_vm2 = vcmask 1043459  }
  0x55   : > { %v221_v1 = vld [vmem:[%s187_s5] sm:$0xff]  ;;  %v344_v3 = vsel %vm259_vm0, %v225_v0, 0.0  ;;  %v223_v4 = vld [vmem:[%s187_s5 + $0x10] sm:$0xff]  ;;  %v226_v6 = vld [vmem:[%s959_s7 + $0x8] sm:$0xff]  ;;  %vm296_vm3 = vcmask 1042434   ;;  %vm301_vm4 = vcmask 60416  }
  0x56   : > { %v229_v5 = vmax.f32 %v221_v1, %v222_v2  ;;  %345 = vadd.xlane.f32.xlu1 %v344_v3  ;;  %v224_v7 = vld [vmem:[%s187_s5 + $0x18] sm:$0xff]  ;;  %v347_v9 = vsel %vm259_vm0, %v226_v6, 0.0  ;;  %v227_v10 = vld [vmem:[%s959_s7 + $0x10] sm:$0xff]  ;;  %v277_v54 = vand.u32 127, %v276_v52  ;;  %v279_v55 = vshrl.u32 %v276_v52, 7  ;;  %s220_s21 = scalar_lea.vmem [#allocation7], %s950_s4 }
  0x57   : > { %v350_v12 = vsel %vm259_vm0, %v227_v10, 0.0  ;;  %v228_v35 = vld [vmem:[%s959_s7 + $0x18] sm:$0xff]  ;;  %vm390_vm5 = vcmask 24576   ;;  %s530_s8 = sshll.u32 %s752_s12, 4  ;;  %s415_s18 = sshll.u32 %s220_s21, 4  ;;  %vm399_vm6 = vcmask 57376   ;;  %s1000_s18 = int_to_ptr.vmem [resolvable:$true] %s415_s18 }
  0x58   : > { %v230_v8 = vmax.f32 %v229_v5, %v223_v4  ;;  %v353_v49 = vsel %vm259_vm0, %v228_v35, 0.0  ;;  %v280_v58 = vsub.s32 %v277_v54, %v279_v55  ;;  %s998_s30 = scalar_lea.hbm %s1049_s2, %s530_s8  ;;  %s402_s3 = scalar_lea.sflag [#allocation4], %s950_s4 }
  0x59   : > { %s674_s15 = scalar_lea.vmem %s1000_s18, 16  ;;  %p1060_p3 = scmp.ne.s32.totalorder %s1054_s22, 0 }
  0x5a   : > { %v231_v11 = vmax.f32 %v230_v8, %v224_v7  ;;  %348 = vadd.xlane.f32.xlu1 %v347_v9  ;;  %p675_p0 = scmp.ne.s32.totalorder %s1000_s18, %s674_s15  ;;  %s766_s12 = smov [#allocation7]  }
  0x5b   : > { %s678_s26 = sshll.u32 %s766_s12, 4  ;;  %s679_s26 = int_to_ptr.vmem [resolvable:$false] %s678_s26 }
  0x5c   : > { %v232_v13 = vsub.f32 %v221_v1, %v231_v11  ;;  %v233_v14 = vsub.f32 %v222_v2, %v231_v11  ;;  %v234_v15 = vsub.f32 %v223_v4, %v231_v11  ;;  %v235_v16 = vsub.f32 %v224_v7, %v231_v11  ;;  %p676_p12 = pnand %p675_p0, %p1060_p3  ;;  %s680_s16 = scalar_lea.vmem %s679_s26, 32 }
  0x5d   : > { %p681_p7 = scmp.lt.s32.totalorder %s1000_s18, %s679_s26  ;;  %p682_p10 = scmp.lt.s32.totalorder %s680_s16, %s674_s15 }
  0x5e   : > { %v236_v17 = vmul.f32 1.442695, %v232_v13  ;;  %v238_v18 = vmul.f32 1.442695, %v233_v14  ;;  %v240_v19 = vmul.f32 1.442695, %v234_v15  ;;  %351 = vadd.xlane.f32.xlu1 %v350_v12  ;;  %p677_p13 = pneg %p676_p12 }
  0x5f   : > { %v242_v20 = vmul.f32 1.442695, %v235_v16  ;;  %p683_p9 = por %p682_p10, %p681_p7 }
  0x60   : > { %604 = vpow2.f32 %v236_v17 }
  0x61   : > { %606 = vpow2.f32 %v238_v18  ;;  %p684_p11 = pnand %p683_p9, %p677_p13 }
  0x62   : > { %608 = vpow2.f32 %v240_v19 }
  0x63   : > { %610 = vpow2.f32 %v242_v20 }
  0x6a   : > { %v605_v21 = vpop.eup %604 }
  0x6b   : > { %v607_v22 = vpop.eup %606 }
  0x6c   : > { %v609_v23 = vpop.eup %608  ;;  %v244_v24 = vadd.f32 %v607_v22, %v605_v21 }
  0x6d   : > { %v611_v25 = vpop.eup %610 }
  0x6e   : > { %v245_v26 = vadd.f32 %v609_v23, %v244_v24 }
  0x70   : > { %v246_v27 = vadd.f32 %v611_v25, %v245_v26 }
  0x72   : > { %612 = vrcp.f32 %v246_v27 }
  0x7c   : > { %v613_v28 = vpop.eup %612 }
  0x7d   : > { %v248_v29 = vmul.f32 %v613_v28, %v246_v27  ;;  %v393_v27 = vadd.s32 4294967292, %v277_v54 }
  0x7f   : > { %v249_v30 = vsub.f32 2.0, %v248_v29 }
  0x81   : > { %v250_v31 = vmul.f32 %v613_v28, %v249_v30  ;;  %v396_v30 = vsub.s32 %v393_v27, %v279_v55 }
  0x83   : > { %v251_v32 = vmul.f32 %v605_v21, %v250_v31  ;;  %v252_v33 = vmul.f32 %v607_v22, %v250_v31  ;;  %v254_v34 = vmul.f32 %v611_v25, %v250_v31  ;;  %v253_v40 = vmul.f32 %v609_v23, %v250_v31 }
  0x85   : > { %v305_v36 = vsel %vm259_vm0, %v251_v32, 0.0  ;;  %v314_v37 = vsel %vm259_vm0, %v254_v34, 0.0  ;;  %v256_v38 = vmul.f32 %v252_v33, %v226_v6  ;;  %v308_v39 = vsel %vm259_vm0, %v252_v33, 0.0 }
  0x86   : > { %306 = vadd.xlane.f32.xlu0 %v305_v36  ;;  %315 = vadd.xlane.f32.xlu1 %v314_v37  ;;  %v258_v41 = vmul.f32 %v254_v34, %v228_v35  ;;  %v255_v43 = vmul.f32 %v251_v32, %v225_v0  ;;  %v311_v44 = vsel %vm259_vm0, %v253_v40, 0.0  ;;  %v257_v47 = vmul.f32 %v253_v40, %v227_v10 }
  0x87   : > { %v263_v42 = vsel %vm259_vm0, %v256_v38, 0.0 }
  0x88   : > { %v269_v45 = vsel %vm259_vm0, %v258_v41, 0.0  ;;  %v260_v46 = vsel %vm259_vm0, %v255_v43, 0.0  ;;  %v266_v48 = vsel %vm259_vm0, %v257_v47, 0.0 }
  0x8a   : > { %309 = vadd.xlane.f32.xlu0 %v308_v39  ;;  %264 = vadd.xlane.f32.xlu1 %v263_v42 }
  0x8e   : > { %312 = vadd.xlane.f32.xlu0 %v311_v44  ;;  %270 = vadd.xlane.f32.xlu1 %v269_v45 }
  0x92   : > { %261 = vadd.xlane.f32.xlu0 %v260_v46 }
  0x96   : > { %267 = vadd.xlane.f32.xlu0 %v266_v48 }
  0x9a   : > { %354 = vadd.xlane.f32.xlu0 %v353_v49 }
  0xe3   : > { %v346_v50 = vpop.xlane.xlu1 %345 }
  0xe4   : > { %v363_v10 = vrot.slane %v346_v50, %v280_v58 }
  0xe7   : > { %v349_v51 = vpop.xlane.xlu1 %348 }
  0xe8   : > { %v367_v11 = vrot.slane %v349_v51, %v280_v58 }
  0xea   : > { %v376_v17 = vsel %vm294_vm1, %v367_v11, %v363_v10 }
  0xeb   : > { %v352_v53 = vpop.xlane.xlu1 %351 }
  0xec   : > { %v371_v15 = vrot.slane %v352_v53, %v280_v58 }
  0xee   : > { %v377_v23 = vsel %vm296_vm3, %v371_v15, %v376_v17 }
 0x113   : > { %v307_v56 = vpop.xlane.xlu0 %306  ;;  %v316_v57 = vpop.xlane.xlu1 %315 }
 0x114   : > { %v324_v62 = vrot.slane %v307_v56, %v280_v58  ;;  %v336_v63 = vrot.slane %v316_v57, %v280_v58 }
 0x117   : > { %v310_v59 = vpop.xlane.xlu0 %309  ;;  %v265_v61 = vpop.xlane.xlu1 %264 }
 0x118   : > { %v328_v60 = vrot.slane %v310_v59, %v280_v58  ;;  %v285_v8 = vrot.slane %v265_v61, %v280_v58 }
 0x11a   : > { %v337_v2 = vsel %vm294_vm1, %v328_v60, %v324_v62 }
 0x11b   : > { %v313_v0 = vpop.xlane.xlu0 %312  ;;  %v271_v7 = vpop.xlane.xlu1 %270 }
 0x11c   : > { %v332_v1 = vrot.slane %v313_v0, %v280_v58  ;;  %v293_v13 = vrot.slane %v271_v7, %v280_v58 }
 0x11e   : > { %v338_v3 = vsel %vm296_vm3, %v332_v1, %v337_v2 }
 0x11f   : > { %v262_v4 = vpop.xlane.xlu0 %261  ;;  %v339_v5 = vsel %vm298_vm2, %v336_v63, %v338_v3 }
 0x120   : > { %v341_v6 = vsel %vm301_vm4, %v339_v5, 0.0  ;;  %v281_v9 = vrot.slane %v262_v4, %v280_v58 }
 0x121   : > { %342 = vadd.xlane.f32.xlu0 %v341_v6 }
 0x122   : > { %v295_v16 = vsel %vm294_vm1, %v285_v8, %v281_v9 }
 0x123   : > { %v268_v12 = vpop.xlane.xlu0 %267 }
 0x124   : > { %v289_v14 = vrot.slane %v268_v12, %v280_v58 }
 0x126   : > { %v297_v18 = vsel %vm296_vm3, %v289_v14, %v295_v16 }
 0x127   : > { %v355_v19 = vpop.xlane.xlu0 %354  ;;  %v299_v20 = vsel %vm298_vm2, %v293_v13, %v297_v18 }
 0x128   : > { %v375_v21 = vrot.slane %v355_v19, %v280_v58  ;;  %v302_v22 = vsel %vm301_vm4, %v299_v20, 0.0 }
 0x129   : > { %303 = vadd.xlane.f32.xlu0 %v302_v22 }
 0x12a   : > { %v378_v24 = vsel %vm298_vm2, %v375_v21, %v377_v23 }
 0x12b   : > { %v380_v25 = vsel %vm301_vm4, %v378_v24, 0.0 }
 0x12c   : > { %381 = vadd.xlane.f32.xlu1 %v380_v25 }
 0x1ae   : > { %v343_v26 = vpop.xlane.xlu0 %342 }
 0x1b6   : > { %v304_v28 = vpop.xlane.xlu0 %303 }
 0x1b7   : > { %v388_v29 = vrot.slane %v304_v28, %v280_v58 }
 0x1b9   : > { %v382_v31 = vpop.xlane.xlu1 %381  ;;  %391 = vst.msk [vmem:[%s220_s21] sm:$0x1] %vm390_vm5, %v388_v29 }
 0x1ba   : > { %v383_v32 = vadd.f32 %v382_v31, %v343_v26 }
 0x1bc   : > { %v397_v33 = vrot.slane %v383_v32, %v396_v30 }
 0x1be   : > { %400 = vst.msk [vmem:[%s220_s21] sm:$0x1] %vm399_vm6, %v397_v33 }
 0x1bf   : > { %687 = shalt.err (!%p684_p11)
}
 0x1c0   : > { %s688_s20 = scalar_lea.hbm %s998_s30, 16  ;;  %s692_s6 = scalar_lea.hbm %s1049_s2, 32 }
 0x1c1   : > { %p689_p1 = scmp.ne.s32.totalorder %s998_s30, %s688_s20  ;;  %p693_p5 = scmp.lt.u32.totalorder %s998_s30, %s1049_s2 }
 0x1c2   : > { %p694_p4 = scmp.lt.u32.totalorder %s692_s6, %s688_s20  ;;  %p696_p0 = scmp.lt.u32.totalorder %s688_s20, %s998_s30 }
 0x1c3   : > { %p690_p6 = pnand %p689_p1, %p1060_p3 }
 0x1c4   : > { %p695_p8 = por %p694_p4, %p693_p5 }
 0x1c5   : > { %p691_p2 = pneg %p690_p6 }
 0x1c6   : > { %p697_p12 = por %p696_p0, %p695_p8 }
 0x1c8   : > { %p698_p13 = pnand %p697_p12, %p691_p2 }
 0x1ca   : > { %701 = shalt.err (!%p698_p13)
}
 0x1cb   : > { %539 = dma.vmem_to_hbm [thread:$0]  (%p1060_p3), %s1000_s18, 16, %s998_s30, %s402_s3  }
 0x1cc PF: > { %s427_s25 = sand.u32 1, %s740_s9   ;;  %p1061_p7 = scmp.ne.s32.totalorder %s1055_s24, 0 }
 0x1cd   : > { %p1062_p10 = scmp.ge.s32.totalorder %s760_s14, 2  ;;  %s428_s7 = scalar_lea.sflag [#allocation4], %s427_s25 }
 0x1cf   : > { %p549_p9 = pnand %p1062_p10, %p1061_p7 }
 0x1d1   : > { %735 = dma.done.wait (!%p549_p9), %s428_s7, 16  }
 0x1d2   : > { %737 = vsyncadd (!%p549_p9), %s428_s7, 4294967280  ;;  %s21_s14 = sadd.s32 1, %s760_s14   ;;  %s1063_s9 = smov %s744_s10 }
 0x1d3   : > { %p18_p11 = scmp.ge.s32.totalorder %s21_s14, 4   ;;  %s1064_s10 = smov %s748_s11 }
 0x1d4   : > { %s1065_s11 = smov %s838_s23  ;;  %s1066_s12 = smov %s756_s13 }
 0x1d5   : > { %s1067_s13 = smov %s1069_s17  ;;  %20 = sbr.rel (!%p18_p11) target bundleno = 8 (0x8), region = 86 }
 0x1dc   :  { %432 = vsyncpa [#allocation3], 1 }
 0x1dd   :  { %434 = vsyncpa [#allocation3 + $0x1], 1 }
 0x1de   :  { %435 = vsyncpa [#allocation6], 1 }
 0x1df   :  { %437 = vsyncpa [#allocation6 + $0x1], 1 }
 0x1e0   :  { %438 = vsyncpa [#allocation4], 1 }
 0x1e1   :  { %440 = vsyncpa [#allocation4 + $0x1], 1 }

</bundles_post_ra>
